<compile_context>
chip_gen: v7x
topology: tpu7x:2x2x1
jax: 0.10.0
libtpu: 0.0.40
codegen_flags: <defaults>
</compile_context>

<pallas_src>
import math

import jax
import jax.numpy as jnp
from jax.experimental import pallas as pl
from jax.experimental.pallas import tpu as pltpu


def _make_rope_kernel(k: int, half: int):
    """k positions packed per row; compute width k*half, store width k*2*half."""
    dim = 2 * half

    def kernel(pos_ref, inv_ref, cos_ref, sin_ref):
        pos = pos_ref[...].astype(jnp.float32)            # (TR, k) int32 -> f32
        tr = pos.shape[0]
        inv = inv_ref[...]                                 # (1, k*half) f32

        # Position expansion across half-wide lane segments:
        #   posx[r, q*half + t] = pos[r, q]
        cols = [jnp.broadcast_to(pos[:, q:q + 1], (tr, half)) for q in range(k)]
        posx = cols[0] if k == 1 else jnp.concatenate(cols, axis=-1)  # (TR, Wh)

        # Unique frequencies only (half of the stored width): exact f32
        # multiply on the VPU, transcendentals on Wh lanes instead of 2*Wh.
        freqs = posx * inv                                 # (TR, Wh)
        ch = jnp.cos(freqs)
        sh = jnp.sin(freqs)

        # emb = cat(freqs, freqs): duplicate every half-wide segment into its
        # dim-wide output segment (pure lane data movement, no extra cos/sin):
        #   out[:, q*dim + j*half + t] = half[:, q*half + t],  j in {0, 1}
        cpieces, spieces = [], []
        for q in range(k):
            cseg = ch[:, q * half:(q + 1) * half]
            sseg = sh[:, q * half:(q + 1) * half]
            cpieces += [cseg, cseg]
            spieces += [sseg, sseg]
        cos_ref[...] = jnp.concatenate(cpieces, axis=-1).astype(cos_ref.dtype)
        sin_ref[...] = jnp.concatenate(spieces, axis=-1).astype(sin_ref.dtype)

    return kernel


_TARGET_OUT_BLOCK_BYTES = 3 * 1024 * 1024     # per output, per pipeline buffer


def phi3_rotary_embedding(x, position_ids, *, dim, base,
                          max_position_embeddings=2048, row_block=None):
    """Returns (cos, sin), each of shape (B, S, dim) with dtype x.dtype."""
    del max_position_embeddings                  # not used by the forward pass
    assert dim % 2 == 0, "head dim must be even"
    half = dim // 2
    B, S = position_ids.shape
    out_dtype = x.dtype
    out_bytes = jnp.dtype(out_dtype).itemsize

    # inv_freq exactly as the module's __init__ (bit-identical to the reference).
    inv_freq = 1.0 / (jnp.float32(base) **
                      (jnp.arange(0, dim, 2, dtype=jnp.float32) / dim))  # (half,)

    # ---- lane-dense packing: k rows per kernel row so that the *unique*
    # frequency width Wh = k*half is a multiple of 128 (dense transcendental
    # lanes) and the store width W = 2*Wh is an unmasked full-lane vst. ----
    k = math.lcm(half, 128) // half
    if k * dim > 2048:                            # unusual head dims: unpacked
        k = 1                                     # (block width == array width)
    Wh = k * half
    W = k * dim
    inv_tiled = jnp.tile(inv_freq, k).reshape(1, Wh).astype(jnp.float32)

    # ---- byte-targeted row tiling over packed rows ----
    R = B * S
    Rq = -(-R // k)                               # packed rows (ceil)
    if row_block is None:
        TR = _TARGET_OUT_BLOCK_BYTES // (W * out_bytes)
        TR = max(256, min(TR, 8192))
    else:
        TR = row_block
    TR = max(8, (TR // 8) * 8)

    if Rq <= TR:                                  # single grid step
        TR = -(-Rq // 8) * 8
        Rq_pad, G = TR, 1
    else:                                         # ragged last block handled by Pallas
        Rq_pad, G = Rq, -(-Rq // TR)

    pos_flat = position_ids.reshape(-1).astype(jnp.int32)
    if Rq_pad * k > R:
        pos_flat = jnp.pad(pos_flat, (0, Rq_pad * k - R))
    pos2 = pos_flat.reshape(Rq_pad, k)

    kernel = _make_rope_kernel(k, half)

    cost = pl.CostEstimate(
        flops=Rq_pad * Wh,                         # one multiply per unique elem
        transcendentals=2 * Rq_pad * Wh,           # cos + sin on unique lanes
        bytes_accessed=Rq_pad * k * 4 + Wh * 4 + 2 * Rq_pad * W * out_bytes,
    )

    cos_p, sin_p = pl.pallas_call(
        kernel,
        grid=(G,),
        in_specs=[
            pl.BlockSpec((TR, k), lambda i: (i, 0)),    # packed position ids
            pl.BlockSpec((1, Wh), lambda i: (0, 0)),    # inv_freq, fetched once
        ],
        out_specs=[
            pl.BlockSpec((TR, W), lambda i: (i, 0)),    # cos (lane-dense)
            pl.BlockSpec((TR, W), lambda i: (i, 0)),    # sin (lane-dense)
        ],
        out_shape=[
            jax.ShapeDtypeStruct((Rq_pad, W), out_dtype),
            jax.ShapeDtypeStruct((Rq_pad, W), out_dtype),
        ],
        compiler_params=pltpu.CompilerParams(
            dimension_semantics=("parallel",),          # 2-TC sharding on v7x
            vmem_limit_bytes=32 * 1024 * 1024,
        ),
        cost_estimate=cost,
    )(pos2, inv_tiled)

    # Free layout plumbing back to (B, S, dim).  The [:R] slice (an extra XLA
    # copy) only triggers when B*S is not a multiple of k.
    def unpack(arr):
        flat = arr.reshape(Rq_pad * k, dim)
        if Rq_pad * k != R:
            flat = flat[:R]
        return flat.reshape(B, S, dim)

    return unpack(cos_p), unpack(sin_p)


def _reference(x, position_ids, *, dim, base):
    """Pure-JAX reference mirroring the PyTorch forward."""
    inv_freq = 1.0 / (jnp.float32(base) **
                      (jnp.arange(0, dim, 2, dtype=jnp.float32) / dim))
    freqs = position_ids.astype(jnp.float32)[:, :, None] * inv_freq[None, None, :]
    emb = jnp.concatenate([freqs, freqs], axis=-1)
    return jnp.cos(emb).astype(x.dtype), jnp.sin(emb).astype(x.dtype)


if __name__ == "__main__":
    key = jax.random.PRNGKey(0)
    base = 10000.0

    # --- test 1: small shape consistent with the module (single grid step) ---
    dim = 32
    B, S = 2, 8
    x = jax.random.normal(key, (B, S, dim), dtype=jnp.float32)   # only dtype is used
    position_ids = jnp.broadcast_to(jnp.arange(S, dtype=jnp.int32), (B, S))

    cos, sin = phi3_rotary_embedding(x, position_ids, dim=dim, base=base)
    cos = jax.block_until_ready(cos)
    sin = jax.block_until_ready(sin)

    cos_ref, sin_ref = _reference(x, position_ids, dim=dim, base=base)
    assert cos.shape == (B, S, dim) and sin.shape == (B, S, dim)
    assert cos.dtype == x.dtype and sin.dtype == x.dtype
    assert jnp.allclose(cos, cos_ref, atol=1e-5, rtol=1e-5)
    assert jnp.allclose(sin, sin_ref, atol=1e-5, rtol=1e-5)

    # --- test 2: multi-block grid with ragged last block and R % k != 0 ---
    B2, S2 = 3, 700                      # R = 2100; row_block=64 forces G > 1
    x2 = jnp.ones((B2, S2, dim), dtype=jnp.float32)
    position_ids2 = jnp.broadcast_to(jnp.arange(S2, dtype=jnp.int32), (B2, S2))

    cos2, sin2 = phi3_rotary_embedding(x2, position_ids2, dim=dim, base=base,
                                       row_block=64)
    cos2 = jax.block_until_ready(cos2)
    sin2 = jax.block_until_ready(sin2)

    cos2_ref, sin2_ref = _reference(x2, position_ids2, dim=dim, base=base)
    assert cos2.shape == (B2, S2, dim)
    assert jnp.allclose(cos2, cos2_ref, atol=2e-3, rtol=0)
    assert jnp.allclose(sin2, sin2_ref, atol=2e-3, rtol=0)

    # --- test 3: Phi3's real head_dim=96 with bf16 activations ---
    dim3, B3, S3 = 96, 2, 128
    x3 = jax.random.normal(jax.random.PRNGKey(1), (B3, S3, dim3), dtype=jnp.bfloat16)
    position_ids3 = jnp.broadcast_to(jnp.arange(S3, dtype=jnp.int32), (B3, S3))

    cos3, sin3 = phi3_rotary_embedding(x3, position_ids3, dim=dim3, base=base)
    cos3 = jax.block_until_ready(cos3)
    sin3 = jax.block_until_ready(sin3)

    cos3_ref, sin3_ref = _reference(x3, position_ids3, dim=dim3, base=base)
    assert cos3.shape == (B3, S3, dim3) and cos3.dtype == jnp.bfloat16
    assert jnp.allclose(cos3.astype(jnp.float32), cos3_ref.astype(jnp.float32),
                        atol=1e-2, rtol=0)
    assert jnp.allclose(sin3.astype(jnp.float32), sin3_ref.astype(jnp.float32),
                        atol=1e-2, rtol=0)

    print("KERNEL_OK")
</pallas_src>

<mosaic_0001>
module attributes {stable_mosaic.version = 11 : i64} {
  func.func @kernel(%arg0: i32, %arg1: memref<8x8xi32, #tpu.memory_space<vmem>>, %arg2: memref<1x128xf32, #tpu.memory_space<vmem>>, %arg3: memref<8x256xf32, #tpu.memory_space<vmem>>, %arg4: memref<8x256xf32, #tpu.memory_space<vmem>>) attributes {dimension_semantics = [#tpu.dimension_semantics<parallel>], iteration_bounds = array<i64: 1>, scalar_prefetch = 0 : i64, scratch_operands = 0 : i64, tpu.core_type = #tpu.core_type<tc>, window_params = [{transform_indices = @transform_0, window_bounds = array<i64: 8, 8>}, {pipeline_mode = #tpu.pipeline_mode<synchronous>, transform_indices = @transform_1, window_bounds = array<i64: 1, 128>}, {transform_indices = @transform_2, window_bounds = array<i64: 8, 256>}, {transform_indices = @transform_3, window_bounds = array<i64: 8, 256>}]} {
    %c0 = arith.constant 0 : index
    %c0_0 = arith.constant 0 : index
    %0 = vector.load %arg1[%c0, %c0_0] : memref<8x8xi32, #tpu.memory_space<vmem>>, vector<8x8xi32>
    %1 = arith.sitofp %0 : vector<8x8xi32> to vector<8x8xf32>
    %c0_1 = arith.constant 0 : index
    %c0_2 = arith.constant 0 : index
    %2 = vector.load %arg2[%c0_1, %c0_2] : memref<1x128xf32, #tpu.memory_space<vmem>>, vector<1x128xf32>
    %3 = vector.extract_strided_slice %1 {offsets = [0, 0], sizes = [8, 1], strides = [1, 1]} : vector<8x8xf32> to vector<8x1xf32>
    %4 = vector.shape_cast %3 : vector<8x1xf32> to vector<8x1xf32>
    %5 = vector.broadcast %4 : vector<8x1xf32> to vector<8x16xf32>
    %6 = vector.extract_strided_slice %1 {offsets = [0, 1], sizes = [8, 1], strides = [1, 1]} : vector<8x8xf32> to vector<8x1xf32>
    %7 = vector.shape_cast %6 : vector<8x1xf32> to vector<8x1xf32>
    %8 = vector.broadcast %7 : vector<8x1xf32> to vector<8x16xf32>
    %9 = vector.extract_strided_slice %1 {offsets = [0, 2], sizes = [8, 1], strides = [1, 1]} : vector<8x8xf32> to vector<8x1xf32>
    %10 = vector.shape_cast %9 : vector<8x1xf32> to vector<8x1xf32>
    %11 = vector.broadcast %10 : vector<8x1xf32> to vector<8x16xf32>
    %12 = vector.extract_strided_slice %1 {offsets = [0, 3], sizes = [8, 1], strides = [1, 1]} : vector<8x8xf32> to vector<8x1xf32>
    %13 = vector.shape_cast %12 : vector<8x1xf32> to vector<8x1xf32>
    %14 = vector.broadcast %13 : vector<8x1xf32> to vector<8x16xf32>
    %15 = vector.extract_strided_slice %1 {offsets = [0, 4], sizes = [8, 1], strides = [1, 1]} : vector<8x8xf32> to vector<8x1xf32>
    %16 = vector.shape_cast %15 : vector<8x1xf32> to vector<8x1xf32>
    %17 = vector.broadcast %16 : vector<8x1xf32> to vector<8x16xf32>
    %18 = vector.extract_strided_slice %1 {offsets = [0, 5], sizes = [8, 1], strides = [1, 1]} : vector<8x8xf32> to vector<8x1xf32>
    %19 = vector.shape_cast %18 : vector<8x1xf32> to vector<8x1xf32>
    %20 = vector.broadcast %19 : vector<8x1xf32> to vector<8x16xf32>
    %21 = vector.extract_strided_slice %1 {offsets = [0, 6], sizes = [8, 1], strides = [1, 1]} : vector<8x8xf32> to vector<8x1xf32>
    %22 = vector.shape_cast %21 : vector<8x1xf32> to vector<8x1xf32>
    %23 = vector.broadcast %22 : vector<8x1xf32> to vector<8x16xf32>
    %24 = vector.extract_strided_slice %1 {offsets = [0, 7], sizes = [8, 1], strides = [1, 1]} : vector<8x8xf32> to vector<8x1xf32>
    %25 = vector.shape_cast %24 : vector<8x1xf32> to vector<8x1xf32>
    %26 = vector.broadcast %25 : vector<8x1xf32> to vector<8x16xf32>
    %27 = tpu.concatenate %5, %8, %11, %14, %17, %20, %23, %26 in 1 : vector<8x16xf32>, vector<8x16xf32>, vector<8x16xf32>, vector<8x16xf32>, vector<8x16xf32>, vector<8x16xf32>, vector<8x16xf32>, vector<8x16xf32> -> vector<8x128xf32>
    %28 = vector.broadcast %2 : vector<1x128xf32> to vector<8x128xf32>
    %29 = arith.mulf %27, %28 : vector<8x128xf32>
    %30 = math.cos %29 : vector<8x128xf32>
    %31 = math.sin %29 : vector<8x128xf32>
    %32 = vector.extract_strided_slice %30 {offsets = [0, 0], sizes = [8, 16], strides = [1, 1]} : vector<8x128xf32> to vector<8x16xf32>
    %33 = vector.extract_strided_slice %31 {offsets = [0, 0], sizes = [8, 16], strides = [1, 1]} : vector<8x128xf32> to vector<8x16xf32>
    %34 = vector.extract_strided_slice %30 {offsets = [0, 16], sizes = [8, 16], strides = [1, 1]} : vector<8x128xf32> to vector<8x16xf32>
    %35 = vector.extract_strided_slice %31 {offsets = [0, 16], sizes = [8, 16], strides = [1, 1]} : vector<8x128xf32> to vector<8x16xf32>
    %36 = vector.extract_strided_slice %30 {offsets = [0, 32], sizes = [8, 16], strides = [1, 1]} : vector<8x128xf32> to vector<8x16xf32>
    %37 = vector.extract_strided_slice %31 {offsets = [0, 32], sizes = [8, 16], strides = [1, 1]} : vector<8x128xf32> to vector<8x16xf32>
    %38 = vector.extract_strided_slice %30 {offsets = [0, 48], sizes = [8, 16], strides = [1, 1]} : vector<8x128xf32> to vector<8x16xf32>
    %39 = vector.extract_strided_slice %31 {offsets = [0, 48], sizes = [8, 16], strides = [1, 1]} : vector<8x128xf32> to vector<8x16xf32>
    %40 = vector.extract_strided_slice %30 {offsets = [0, 64], sizes = [8, 16], strides = [1, 1]} : vector<8x128xf32> to vector<8x16xf32>
    %41 = vector.extract_strided_slice %31 {offsets = [0, 64], sizes = [8, 16], strides = [1, 1]} : vector<8x128xf32> to vector<8x16xf32>
    %42 = vector.extract_strided_slice %30 {offsets = [0, 80], sizes = [8, 16], strides = [1, 1]} : vector<8x128xf32> to vector<8x16xf32>
    %43 = vector.extract_strided_slice %31 {offsets = [0, 80], sizes = [8, 16], strides = [1, 1]} : vector<8x128xf32> to vector<8x16xf32>
    %44 = vector.extract_strided_slice %30 {offsets = [0, 96], sizes = [8, 16], strides = [1, 1]} : vector<8x128xf32> to vector<8x16xf32>
    %45 = vector.extract_strided_slice %31 {offsets = [0, 96], sizes = [8, 16], strides = [1, 1]} : vector<8x128xf32> to vector<8x16xf32>
    %46 = vector.extract_strided_slice %30 {offsets = [0, 112], sizes = [8, 16], strides = [1, 1]} : vector<8x128xf32> to vector<8x16xf32>
    %47 = vector.extract_strided_slice %31 {offsets = [0, 112], sizes = [8, 16], strides = [1, 1]} : vector<8x128xf32> to vector<8x16xf32>
    %48 = tpu.concatenate %32, %32, %34, %34, %36, %36, %38, %38, %40, %40, %42, %42, %44, %44, %46, %46 in 1 : vector<8x16xf32>, vector<8x16xf32>, vector<8x16xf32>, vector<8x16xf32>, vector<8x16xf32>, vector<8x16xf32>, vector<8x16xf32>, vector<8x16xf32>, vector<8x16xf32>, vector<8x16xf32>, vector<8x16xf32>, vector<8x16xf32>, vector<8x16xf32>, vector<8x16xf32>, vector<8x16xf32>, vector<8x16xf32> -> vector<8x256xf32>
    %c0_3 = arith.constant 0 : index
    %c0_4 = arith.constant 0 : index
    %49 = vector.load %arg3[%c0_3, %c0_4] : memref<8x256xf32, #tpu.memory_space<vmem>>, vector<8x256xf32>
    tpu.vector_store %arg3[%c0_3, %c0_4], %48 {strides = array<i32>} : memref<8x256xf32, #tpu.memory_space<vmem>>, vector<8x256xf32>,
    %50 = tpu.concatenate %33, %33, %35, %35, %37, %37, %39, %39, %41, %41, %43, %43, %45, %45, %47, %47 in 1 : vector<8x16xf32>, vector<8x16xf32>, vector<8x16xf32>, vector<8x16xf32>, vector<8x16xf32>, vector<8x16xf32>, vector<8x16xf32>, vector<8x16xf32>, vector<8x16xf32>, vector<8x16xf32>, vector<8x16xf32>, vector<8x16xf32>, vector<8x16xf32>, vector<8x16xf32>, vector<8x16xf32>, vector<8x16xf32> -> vector<8x256xf32>
    %c0_5 = arith.constant 0 : index
    %c0_6 = arith.constant 0 : index
    %51 = vector.load %arg4[%c0_5, %c0_6] : memref<8x256xf32, #tpu.memory_space<vmem>>, vector<8x256xf32>
    tpu.vector_store %arg4[%c0_5, %c0_6], %50 {strides = array<i32>} : memref<8x256xf32, #tpu.memory_space<vmem>>, vector<8x256xf32>,
    return
  }
  func.func @transform_0(%arg0: i32) -> (i32, i32) {
    %c0_i32 = arith.constant 0 : i32
    %c0_i32_0 = arith.constant 0 : i32
    return %arg0, %c0_i32 : i32, i32
  }
  func.func @transform_1(%arg0: i32) -> (i32, i32) {
    %c0_i32 = arith.constant 0 : i32
    %c0_i32_0 = arith.constant 0 : i32
    %c0_i32_1 = arith.constant 0 : i32
    return %c0_i32, %c0_i32_0 : i32, i32
  }
  func.func @transform_2(%arg0: i32) -> (i32, i32) {
    %c0_i32 = arith.constant 0 : i32
    %c0_i32_0 = arith.constant 0 : i32
    return %arg0, %c0_i32 : i32, i32
  }
  func.func @transform_3(%arg0: i32) -> (i32, i32) {
    %c0_i32 = arith.constant 0 : i32
    %c0_i32_0 = arith.constant 0 : i32
    return %arg0, %c0_i32 : i32, i32
  }
}

</mosaic_0001>

<bundles_post_ra>
// kernel: tpu_custom_call.1
= control target key start
LH: loop header
LB: loop body
LE: loop exit
PB: predicated region body
PF: predicated region fallthrough
CT: control target
= control target key end

     0   :  { %9 = vsyncpa [#allocation3], 0  ;;  %s668_s0 = inlined_call_operand.hbm [shape: s32[8,8], index: 0, kind: input, shape index: {}]   ;;  %s669_s1 = inlined_call_operand.vmem [shape: f32[1,128], index: 1, kind: input, shape index: {}]   ;;  %s670_s2 = inlined_call_operand.hbm [shape: f32[8,256], index: 2, kind: output, shape index: {0}]   ;;  %s671_s3 = inlined_call_operand.hbm [shape: f32[8,256], index: 3, kind: output, shape index: {1}]  }
   0x1   :  { %10 = vsyncpa [#allocation4], 0 }
   0x2   :  { %11 = vsyncpa [#allocation7], 0  ;;  %s518_s12 = smov [#allocation2]   ;;  %s446_s16 = scalar_lea.hbm %s668_s0, 128 }
   0x3   :  { %s18_s13 = sshll.u32 %s518_s12, 4  ;;  %p447_p0 = scmp.ne.s32.totalorder %s668_s0, %s446_s16  ;;  %s19_s13 = int_to_ptr.vmem [resolvable:$true] %s18_s13 }
   0x4   :  { %p450_p1 = scmp.lt.u32.totalorder %s446_s16, %s668_s0 }
   0x6   :  { %p452_p2 = pnand %p450_p1, %p447_p0 }
   0x8   :  { %455 = shalt.err (!%p452_p2)
}
   0x9   :  { %s456_s21 = scalar_lea.vmem %s19_s13, 128  ;;  %p461_p4 = scmp.lt.s32.totalorder %s19_s13, %s19_s13 }
   0xa   :  { %p457_p3 = scmp.ne.s32.totalorder %s19_s13, %s456_s21  ;;  %p462_p5 = scmp.lt.s32.totalorder %s456_s21, %s456_s21 }
   0xc   :  { %p463_p6 = por %p462_p5, %p461_p4 }
   0xe   :  { %p464_p7 = pnand %p463_p6, %p457_p3 }
  0x10   :  { %467 = shalt.err (!%p464_p7)
}
  0x11   :  { %21 = dma.hbm_to_vmem [thread:$0]  %s668_s0, 128, %s19_s13, [#allocation3]  }
  0x12   :  { %512 = dma.done.wait [#allocation3], 128  }
  0x13   :  { %513 = vsyncadd [#allocation3], 4294967168  ;;  %v519_v0 = vmov 2   ;;  %v520_v1 = vmov 0   ;;  %v27_v2 = vld [vmem:[#allocation2] sm:$0xff]  ;;  %v521_v4 = vmov 3  }
  0x14   :  { %435 = vset.pattern.permute.xlu1 %v519_v0  ;;  %433 = vset.pattern.permute.xlu0 %v520_v1  ;;  %v28_v3 = vcvt.s32.f32 %v27_v2  ;;  %v522_v5 = vmov 1   ;;  %v523_v6 = vmov 4   ;;  %v524_v7 = vmov 5   ;;  %v396_v22 = vld [vmem:[%s669_s1] ss:$0 sm:$0xff]  ;;  %s533_s1 = smov 64  }
  0x15   :  { %v525_v8 = vmov 6   ;;  %v526_v9 = vmov 7   ;;  %vm63_vm0 = vcmask 130048   ;;  %vm65_vm1 = vcmask 261120   ;;  %s534_s25 = smov 16   ;;  %s535_s26 = smov 80  }
  0x16   :  { %40 = vperm.xlu1 %435, %v28_v3   ;;  %32 = vperm.xlu0 %433, %v28_v3   ;;  %vm67_vm2 = vcmask 392192   ;;  %vm69_vm3 = vcmask 523264   ;;  %vm71_vm4 = vcmask 654336   ;;  %vm73_vm5 = vcmask 785408   ;;  %s536_s27 = smov 96   ;;  %s537_s28 = smov 32  }
  0x17   :  { %vm75_vm6 = vcmask 916480   ;;  %v527_v37 = vmov 683565275   ;;  %v528_v39 = vmov 2475754826   ;;  %s538_s29 = smov 112  }
  0x18   :  { %v529_v42 = vmov 2131351028   ;;  %v530_v45 = vmov 2102212464   ;;  %v531_v48 = vmov 920167782  }
  0x19   :  { %v532_v51 = vmov 1326507024   ;;  %s539_s30 = smov 48   ;;  %s540_s4 = smov [#allocation5]  }
  0x1a   :  { %436 = vset.pattern.permute.xlu1 %v521_v4  ;;  %434 = vset.pattern.permute.xlu0 %v522_v5  ;;  %s373_s5 = sshll.u32 %s540_s4, 4  ;;  %s541_s6 = smov [#allocation6]   ;;  %s374_s5 = int_to_ptr.vmem [resolvable:$true] %s373_s5 }
  0x1b   :  { %44 = vperm.xlu1 %436, %v28_v3   ;;  %36 = vperm.xlu0 %434, %v28_v3   ;;  %s383_s7 = sshll.u32 %s541_s6, 4  ;;  %s468_s8 = scalar_lea.vmem %s374_s5, 256  ;;  %s384_s7 = int_to_ptr.vmem [resolvable:$true] %s383_s7 }
  0x1c   :  { %p469_p8 = scmp.ne.s32.totalorder %s374_s5, %s468_s8  ;;  %p473_p9 = scmp.lt.s32.totalorder %s374_s5, %s374_s5 }
  0x1d   :  { %p474_p10 = scmp.lt.s32.totalorder %s468_s8, %s468_s8 }
  0x1f   :  { %437 = vset.pattern.permute.xlu1 %v523_v6  ;;  %438 = vset.pattern.permute.xlu0 %v524_v7  ;;  %p475_p11 = por %p474_p10, %p473_p9 }
  0x20   :  { %48 = vperm.xlu1 %437, %v28_v3   ;;  %52 = vperm.xlu0 %438, %v28_v3  }
  0x21   :  { %p476_p12 = pnand %p475_p11, %p469_p8 }
  0x24   :  { %439 = vset.pattern.permute.xlu1 %v525_v8  ;;  %441 = vset.pattern.permute.xlu0 %v526_v9 }
  0x25   :  { %56 = vperm.xlu1 %439, %v28_v3  }
  0x29   :  { %440 = vset.pattern.permute.xlu1 %v526_v9 }
  0x2a   :  { %60 = vperm.xlu1 %440, %v28_v3  }
  0x95   :  { %v41_v10 = vpop.permute.xlu1 %40  ;;  %v33_v11 = vpop.permute.xlu0 %32 }
  0x9a   :  { %v45_v12 = vpop.permute.xlu1 %44  ;;  %v37_v13 = vpop.permute.xlu0 %36 }
  0x9b   :  { %v64_v14 = vsel %vm63_vm0, %v33_v11, %v37_v13 }
  0x9c   :  { %v66_v16 = vsel %vm65_vm1, %v64_v14, %v41_v10 }
  0x9d   :  { %v68_v17 = vsel %vm67_vm2, %v66_v16, %v45_v12 }
  0x9f   :  { %v49_v15 = vpop.permute.xlu1 %48  ;;  %v53_v20 = vpop.permute.xlu0 %52 }
  0xa0   :  { %v70_v19 = vsel %vm69_vm3, %v68_v17, %v49_v15 }
  0xa1   :  { %v72_v21 = vsel %vm71_vm4, %v70_v19, %v53_v20 }
  0xa4   :  { %v57_v18 = vpop.permute.xlu1 %56 }
  0xa5   :  { %v74_v23 = vsel %vm73_vm5, %v72_v21, %v57_v18 }
  0xa9   :  { %v61_v24 = vpop.permute.xlu1 %60 }
  0xaa   :  { %v76_v25 = vsel %vm75_vm6, %v74_v23, %v61_v24 }
  0xab   :  { %v584_v26 = vmul.f32 %v396_v22, %v76_v25 }
  0xad   :  { %v87_v27 = vand.u32 2139095040, %v584_v26  ;;  %v84_v31 = vand.u32 2147483647, %v584_v26  ;;  %vm86_vm14 = vcmp.lt.s32.totalorder %v584_v26, 0 }
  0xaf   :  { %v88_v28 = vshrl.u32 %v87_v27, 23  ;;  %v91_v34 = vand.u32 8388607, %v84_v31  ;;  %vm85_vm15 = vcmp.le.f32.partialorder %v84_v31, 0.7853982 }
  0xb1   :  { %v397_v29 = vadd.s32 4294967169, %v88_v28  ;;  %v92_v53 = vor.u32 8388608, %v91_v34 }
  0xb3   :  { %v94_v30 = vadd.s32 1, %v397_v29  ;;  %v132_v3 = vshll.u32 %v92_v53, 8 }
  0xb5   :  { %vm95_vm7 = vcmp.gt.s32.totalorder %v94_v30, 0 }
  0xb6   :  { %v96_v32 = vsel %vm95_vm7, %v94_v30, 0 }
  0xb7   :  { %v98_v33 = vand.u32 31, %v96_v32  ;;  %v97_v36 = vshrl.u32 %v96_v32, 5 }
  0xb9   :  { %v99_v35 = vsub.s32 32, %v98_v33  ;;  %v101_v38 = vshll.u32 %v527_v37, %v98_v33  ;;  %v104_v40 = vshll.u32 %v528_v39, %v98_v33  ;;  %v107_v44 = vshll.u32 %v529_v42, %v98_v33 }
  0xba   :  { %v110_v47 = vshll.u32 %v530_v45, %v98_v33  ;;  %v113_v50 = vshll.u32 %v531_v48, %v98_v33  ;;  %vm116_vm8 = vcmp.lt.s32.totalorder %v97_v36, 1  ;;  %vm119_vm9 = vcmp.lt.s32.totalorder %v97_v36, 4 }
  0xbb   :  { %v102_v41 = vshrl.u32 %v528_v39, %v99_v35  ;;  %v105_v43 = vshrl.u32 %v529_v42, %v99_v35  ;;  %v108_v46 = vshrl.u32 %v530_v45, %v99_v35  ;;  %v111_v49 = vshrl.u32 %v531_v48, %v99_v35 }
  0xbc   :  { %v114_v52 = vshrl.u32 %v532_v51, %v99_v35  ;;  %v100_v62 = vshrl.u32 %v527_v37, %v99_v35  ;;  %vm118_vm10 = vcmp.lt.s32.totalorder %v97_v36, 3  ;;  %vm117_vm11 = vcmp.lt.s32.totalorder %v97_v36, 2 }
  0xbd   :  { %v103_v54 = vor.u32 %v102_v41, %v101_v38  ;;  %v106_v55 = vor.u32 %v105_v43, %v104_v40  ;;  %v109_v56 = vor.u32 %v108_v46, %v107_v44  ;;  %v112_v57 = vor.u32 %v111_v49, %v110_v47 }
  0xbe   :  { %v115_v58 = vor.u32 %v114_v52, %v113_v50 }
  0xbf   :  { %v121_v59 = vsel %vm119_vm9, %v109_v56, 2102212464  ;;  %v124_v60 = vsel %vm116_vm8, %v103_v54, %v106_v55  ;;  %v128_v61 = vsel %vm116_vm8, %v106_v55, %v109_v56  ;;  %v125_v63 = vsel %vm119_vm9, %v112_v57, 920167782 }
  0xc0   :  { %v129_v0 = vsel %vm119_vm9, %v115_v58, 1326507024  ;;  %v126_v1 = vsel %vm118_vm10, %v109_v56, %v125_v63  ;;  %v120_v4 = vsel %vm116_vm8, %v100_v62, %v103_v54  ;;  %v122_v5 = vsel %vm118_vm10, %v106_v55, %v121_v59 }
  0xc1   :  { %v130_v2 = vsel %vm118_vm10, %v112_v57, %v129_v0  ;;  %v127_v6 = vsel %vm117_vm11, %v124_v60, %v126_v1  ;;  %v123_v12 = vsel %vm117_vm11, %v120_v4, %v122_v5 }
  0xc2   :  { %v131_v7 = vsel %vm117_vm11, %v128_v61, %v130_v2  ;;  %v593_v10 = vmul.u32.u64.low %v132_v3, %v127_v6  ;;  %v594_v11 = vmul.u32.u64.high %v132_v3, %v127_v6, %v593_v10  ;;  %v139_v14 = vmul.u32 %v132_v3, %v123_v12 }
  0xc3   :  { %v590_v8 = vmul.u32.u64.low %v132_v3, %v131_v7  ;;  %v591_v9 = vmul.u32.u64.high %v132_v3, %v131_v7, %v590_v8 }
  0xc4   :  { %v142_v13 = vadd.s32 1, %v594_v11 }
  0xc5   :  { %vm141_vm12 = vc.u32 %v591_v9, %v593_v10  ;;  %v140_v27 = vadd.s32 %v593_v10, %v591_v9 }
  0xc6   :  { %v143_v15 = vsel %vm141_vm12, %v142_v13, %v594_v11  ;;  %vm176_vm12 = vweird.f32 %v584_v26 }
  0xc7   :  { %v144_v16 = vadd.s32 %v143_v15, %v139_v14 }
  0xc9   :  { %v145_v17 = vadd.s32 536870912, %v144_v16 }
  0xcb   :  { %v146_v18 = vshrl.u32 %v145_v17, 30 }
  0xcd   :  { %v147_v19 = vshll.u32 %v146_v18, 30  ;;  %v170_v40 = vsub.s32 4, %v146_v18 }
  0xcf   :  { %v148_v20 = vsub.s32 %v144_v16, %v147_v19  ;;  %v171_v43 = vsel %vm86_vm14, %v170_v40, %v146_v18 }
  0xd0   :  { %v173_v45 = vsel %vm85_vm15, 0, %v171_v43 }
  0xd1   :  { %v150_v21 = vsub.s32 0, %v148_v20  ;;  %v280_v46 = vadd.s32 3, %v173_v45  ;;  %v177_v47 = vand.u32 3, %v173_v45 }
  0xd3   :  { %v398_v22 = vmin.u32 %v150_v21, %v148_v20  ;;  %v281_v48 = vand.u32 3, %v280_v46  ;;  %vm182_vm7 = vcmp.eq.s32.totalorder %v177_v47, 2  ;;  %vm179_vm8 = vcmp.eq.s32.totalorder %v177_v47, 0 }
  0xd4   :  { %vm178_vm11 = vcmp.lt.s32.totalorder %v177_v47, 2 }
  0xd5   :  { %v152_v23 = vclz %v398_v22  ;;  %vm283_vm9 = vcmp.eq.s32.totalorder %v281_v48, 0  ;;  %vm286_vm10 = vcmp.eq.s32.totalorder %v281_v48, 2 }
  0xd7   :  { %v399_v24 = vadd.s32 4294967294, %v152_v23 }
  0xd9   :  { %vm400_vm13 = vcmp.lt.s32.totalorder %v399_v24, 0 }
  0xda   :  { %v155_v25 = vsel %vm400_vm13, 0, %v399_v24  ;;  %vm282_vm13 = vcmp.lt.s32.totalorder %v281_v48, 2 }
  0xdb   :  { %v156_v28 = vsub.s32 32, %v155_v25  ;;  %v160_v29 = vsub.s32 4294967266, %v155_v25  ;;  %v157_v30 = vshll.u32 %v148_v20, %v155_v25 }
  0xdd   :  { %v158_v32 = vshrl.u32 %v140_v27, %v156_v28  ;;  %v161_v33 = vadd.s32 127, %v160_v29 }
  0xdf   :  { %v159_v34 = vor.u32 %v158_v32, %v157_v30  ;;  %v162_v35 = vshll.u32 %v161_v33, 23 }
  0xe1   :  { %v163_v36 = vor.u32 4788187, %v162_v35  ;;  %v166_v38 = vcvt.s32.f32 %v159_v34 }
  0xe3   :  { %v164_v37 = vand.u32 2147483647, %v163_v36 }
  0xe5   :  { %v167_v39 = vmul.f32 %v166_v38, %v164_v37 }
  0xe7   :  { %v168_v41 = vxor.u32 2147483648, %v167_v39 }
  0xe9   :  { %v169_v42 = vsel %vm86_vm14, %v168_v41, %v167_v39 }
  0xea   :  { %v172_v44 = vsel %vm85_vm15, %v584_v26, %v169_v42 }
  0xeb   :  { %442 = vcosq.f32 %v172_v44 }
  0xec   :  { %444 = vsinq.f32 %v172_v44 }
  0xf5   :  { %v443_v49 = vpop.eup %442 }
  0xf6   :  { %v445_v50 = vpop.eup %444  ;;  %v183_v51 = vxor.u32 2147483648, %v443_v49 }
  0xf7   :  { %v180_v52 = vxor.u32 2147483648, %v445_v50 }
  0xf8   :  { %v184_v53 = vsel %vm182_vm7, %v183_v51, %v445_v50  ;;  %v288_v55 = vsel %vm286_vm10, %v183_v51, %v445_v50 }
  0xf9   :  { %v181_v31 = vsel %vm179_vm8, %v443_v49, %v180_v52  ;;  %v285_v54 = vsel %vm283_vm9, %v443_v49, %v180_v52 }
  0xfa   :  { %v185_v56 = vsel %vm178_vm11, %v181_v31, %v184_v53  ;;  %v289_v58 = vsel %vm282_vm13, %v285_v54, %v288_v55 }
  0xfb   :  { %v186_v57 = vsel %vm176_vm12, nan, %v185_v56  ;;  %v605_v59 = vsel %vm176_vm12, nan, %v289_v58 }
  0xfc   :  { %301 = vrot.lane.b32.xlu1 %v186_v57, %s533_s1  ;;  %292 = vrot.lane.b32.xlu0 %v186_v57, %s534_s25 }
 0x100   :  { %330 = vrot.lane.b32.xlu1 %v605_v59, %s534_s25  ;;  %304 = vrot.lane.b32.xlu0 %v186_v57, %s535_s26 }
 0x104   :  { %342 = vrot.lane.b32.xlu1 %v605_v59, %s535_s26  ;;  %339 = vrot.lane.b32.xlu0 %v605_v59, %s533_s1 }
 0x108   :  { %307 = vrot.lane.b32.xlu1 %v186_v57, %s536_s27  ;;  %295 = vrot.lane.b32.xlu0 %v186_v57, %s537_s28 }
 0x10c   :  { %345 = vrot.lane.b32.xlu1 %v605_v59, %s536_s27  ;;  %333 = vrot.lane.b32.xlu0 %v605_v59, %s537_s28 }
 0x110   :  { %310 = vrot.lane.b32.xlu1 %v186_v57, %s538_s29  ;;  %298 = vrot.lane.b32.xlu0 %v186_v57, %s539_s30 }
 0x114   :  { %348 = vrot.lane.b32.xlu1 %v605_v59, %s538_s29  ;;  %336 = vrot.lane.b32.xlu0 %v605_v59, %s539_s30 }
 0x16e   :  { %v302_v26 = vpop.permute.xlu1 %301  ;;  %v293_v60 = vpop.permute.xlu0 %292 }
 0x16f   :  { %v313_v3 = vsel %vm63_vm0, %v186_v57, %v293_v60 }
 0x170   :  { %v314_v5 = vsel %vm65_vm1, %v313_v3, %v293_v60 }
 0x172   :  { %v331_v61 = vpop.permute.xlu1 %330  ;;  %v305_v62 = vpop.permute.xlu0 %304 }
 0x173   :  { %v320_v4 = vsel %vm63_vm0, %v302_v26, %v305_v62  ;;  %v351_v9 = vsel %vm63_vm0, %v605_v59, %v331_v61 }
 0x174   :  { %v321_v6 = vsel %vm65_vm1, %v320_v4, %v305_v62  ;;  %v352_v13 = vsel %vm65_vm1, %v351_v9, %v331_v61 }
 0x176   :  { %v343_v63 = vpop.permute.xlu1 %342  ;;  %v340_v0 = vpop.permute.xlu0 %339 }
 0x177   :  { %v358_v10 = vsel %vm63_vm0, %v340_v0, %v343_v63 }
 0x178   :  { %v359_v16 = vsel %vm65_vm1, %v358_v10, %v343_v63 }
 0x17a   :  { %v308_v1 = vpop.permute.xlu1 %307  ;;  %v296_v2 = vpop.permute.xlu0 %295 }
 0x17b   :  { %v322_v11 = vsel %vm67_vm2, %v321_v6, %v308_v1  ;;  %v315_v12 = vsel %vm67_vm2, %v314_v5, %v296_v2 }
 0x17c   :  { %v323_v14 = vsel %vm69_vm3, %v322_v11, %v308_v1  ;;  %v316_v15 = vsel %vm69_vm3, %v315_v12, %v296_v2 }
 0x17e   :  { %v346_v7 = vpop.permute.xlu1 %345  ;;  %v334_v8 = vpop.permute.xlu0 %333 }
 0x17f   :  { %v360_v19 = vsel %vm67_vm2, %v359_v16, %v346_v7  ;;  %v353_v20 = vsel %vm67_vm2, %v352_v13, %v334_v8 }
 0x180   :  { %v361_v28 = vsel %vm69_vm3, %v360_v19, %v346_v7  ;;  %v354_v29 = vsel %vm69_vm3, %v353_v20, %v334_v8 }
 0x182   :  { %v311_v17 = vpop.permute.xlu1 %310  ;;  %v299_v18 = vpop.permute.xlu0 %298 }
 0x183   :  { %v324_v21 = vsel %vm71_vm4, %v323_v14, %v311_v17  ;;  %v317_v22 = vsel %vm71_vm4, %v316_v15, %v299_v18 }
 0x184   :  { %v325_v23 = vsel %vm73_vm5, %v324_v21, %v311_v17  ;;  %v318_v24 = vsel %vm73_vm5, %v317_v22, %v299_v18 }
 0x185   :  { %v326_v25 = vsel %vm75_vm6, %v325_v23, %v186_v57  ;;  %v319_v27 = vsel %vm75_vm6, %v318_v24, %v302_v26 }
 0x186   :  { %328 = vst [vmem:[#allocation5 + $0x8] sm:$0xff] %v326_v25  ;;  %327 = vst [vmem:[#allocation5] sm:$0xff] %v319_v27  ;;  %v349_v30 = vpop.permute.xlu1 %348  ;;  %v337_v32 = vpop.permute.xlu0 %336 }
 0x187   :  { %v362_v33 = vsel %vm71_vm4, %v361_v28, %v349_v30  ;;  %v355_v34 = vsel %vm71_vm4, %v354_v29, %v337_v32 }
 0x188   :  { %479 = shalt.err (!%p476_p12)
}
 0x189   :  { %s480_s11 = scalar_lea.hbm %s670_s2, 256 }
 0x18a   :  { %p481_p13 = scmp.ne.s32.totalorder %s670_s2, %s480_s11  ;;  %p484_p0 = scmp.lt.u32.totalorder %s480_s11, %s670_s2 }
 0x18c   :  { %p486_p1 = pnand %p484_p0, %p481_p13 }
 0x18e   :  { %489 = shalt.err (!%p486_p1)
}
 0x18f   :  { %376 = dma.vmem_to_hbm [thread:$0]  %s374_s5, 256, %s670_s2, [#allocation4]   ;;  %v363_v35 = vsel %vm73_vm5, %v362_v33, %v349_v30  ;;  %v356_v36 = vsel %vm73_vm5, %v355_v34, %v337_v32 }
 0x190   :  { %v364_v37 = vsel %vm75_vm6, %v363_v35, %v605_v59  ;;  %v357_v38 = vsel %vm75_vm6, %v356_v36, %v340_v0  ;;  %s490_s18 = scalar_lea.vmem %s384_s7, 256  ;;  %p495_p3 = scmp.lt.s32.totalorder %s384_s7, %s384_s7 }
 0x191   :  { %366 = vst [vmem:[#allocation6 + $0x8] sm:$0xff] %v364_v37  ;;  %365 = vst [vmem:[#allocation6] sm:$0xff] %v357_v38  ;;  %p491_p2 = scmp.ne.s32.totalorder %s384_s7, %s490_s18  ;;  %p496_p4 = scmp.lt.s32.totalorder %s490_s18, %s490_s18 }
 0x193   :  { %p497_p5 = por %p496_p4, %p495_p3 }
 0x195   :  { %p498_p6 = pnand %p497_p5, %p491_p2 }
 0x197   :  { %501 = shalt.err (!%p498_p6)
}
 0x198   :  { %s502_s20 = scalar_lea.hbm %s671_s3, 256 }
 0x199   :  { %p503_p7 = scmp.ne.s32.totalorder %s671_s3, %s502_s20  ;;  %p506_p8 = scmp.lt.u32.totalorder %s502_s20, %s671_s3 }
 0x19b   :  { %p508_p9 = pnand %p506_p8, %p503_p7 }
 0x19d   :  { %511 = shalt.err (!%p508_p9)
}
 0x19e   :  { %386 = dma.vmem_to_hbm [thread:$0]  %s384_s7, 256, %s671_s3, [#allocation7]  }
 0x19f   :  { %514 = dma.done.wait [#allocation4], 256  }
 0x1a0   :  { %515 = vsyncadd [#allocation4], 4294967040 }
 0x1a1   :  { %516 = dma.done.wait [#allocation7], 256  }
 0x1a2   :  { %517 = vsyncadd [#allocation7], 4294967040 }
 0x1a3   :  { %393 = vsyncpa [#allocation3], 1 }
 0x1a4   :  { %394 = vsyncpa [#allocation4], 1 }
 0x1a5   :  { %395 = vsyncpa [#allocation7], 1 }

</bundles_post_ra>
